<compile_context>
chip_gen: v6e
topology: v6e:2x2x1
jax: 0.10.0
libtpu: 0.0.40
codegen_flags: <defaults>
</compile_context>

<pallas_src>
import jax
import jax.numpy as jnp
from jax.experimental import pallas as pl
from jax.experimental.pallas import tpu as pltpu

HIDDEN_PAD = 128  # 20-wide and 10-wide hidden layers zero-padded to one lane width


def _round_up(x, m):
    return ((x + m - 1) // m) * m


def sae_kernel(x_ref,
               w1_ref, b1_ref,
               w2_ref, b2_ref,
               w3_ref, b3_ref,
               w4_ref, b4_ref,
               out_ref):
    # bf16 operands -> native MXU path; accumulate in f32; bias/sigmoid in f32.
    x = x_ref[...].astype(jnp.bfloat16)
    h = jax.nn.sigmoid(
        jnp.dot(x, w1_ref[...], preferred_element_type=jnp.float32) + b1_ref[...])
    h = jax.nn.sigmoid(
        jnp.dot(h.astype(jnp.bfloat16), w2_ref[...],
                preferred_element_type=jnp.float32) + b2_ref[...])
    h = jax.nn.sigmoid(
        jnp.dot(h.astype(jnp.bfloat16), w3_ref[...],
                preferred_element_type=jnp.float32) + b3_ref[...])
    out_ref[...] = (
        jnp.dot(h.astype(jnp.bfloat16), w4_ref[...],
                preferred_element_type=jnp.float32) + b4_ref[...]
    ).astype(out_ref.dtype)


def prepare_params(params, nb_movies):
    """One-time prep: transpose PyTorch [out, in] weights to [in, out],
    zero-pad the tiny hidden dims (20, 10) to 128 lanes, cast weights to bf16.
    The feature axis (nb_movies) is NOT padded, so x / out need no host-side
    pad or unpad passes.  Zero-padding of the hidden dims is exact: padded
    hidden units get bias 0 -> sigmoid 0.5, but the next layer's padded
    weight rows are zero, so they contribute nothing."""
    h = HIDDEN_PAD

    def pad_w(w_t, rows, cols):
        out = jnp.zeros((rows, cols), jnp.float32)
        return out.at[:w_t.shape[0], :w_t.shape[1]].set(w_t).astype(jnp.bfloat16)

    def pad_b(b, cols):
        out = jnp.zeros((1, cols), jnp.float32)
        return out.at[0, :b.shape[0]].set(b)

    w1 = pad_w(params["w1"].T, nb_movies, h)
    b1 = pad_b(params["b1"], h)
    w2 = pad_w(params["w2"].T, h, h)
    b2 = pad_b(params["b2"], h)
    w3 = pad_w(params["w3"].T, h, h)
    b3 = pad_b(params["b3"], h)
    w4 = pad_w(params["w4"].T, h, nb_movies)
    b4 = pad_b(params["b4"], nb_movies)
    return (w1, b1, w2, b2, w3, b3, w4, b4)


def _vmem_budgets():
    """Generation-aware budgets: v7x has 64 MiB VMEM/TC, v5e/v6e 128 MiB."""
    try:
        vmem_cap = pltpu.get_tpu_info().vmem_capacity_bytes
    except Exception:  # unknown target -> be conservative (v7x-like)
        vmem_cap = 64 << 20
    if vmem_cap <= (64 << 20):      # v7x-class
        return 16 << 20, 48 << 20   # io_budget, vmem ceiling
    return 40 << 20, 96 << 20       # v5e / v6e


def sae_forward(x, prepared, *, block_batch=None):
    batch, nb_movies = x.shape
    w1, b1, w2, b2, w3, b3, w4, b4 = prepared

    io_budget, vmem_ceiling = _vmem_budgets()

    # Batch tile: multiple of 8 (sublane) or the full batch when batch <= 8.
    # Auto size keeps double-buffered x+out tiles within io_budget, and is
    # capped so large batches still yield >= ~8 grid steps (megacore balance).
    if batch <= 8:
        tb = batch
    elif block_batch is not None:
        tb = max(8, min((block_batch // 8) * 8, _round_up(batch, 8)))
    else:
        tb_auto = max(8, (io_budget // (16 * nb_movies)) // 8 * 8)
        tb_balance = max(8, _round_up(-(-batch // 8), 8))
        tb = min(tb_auto, tb_balance, _round_up(batch, 8))
    grid = (pl.cdiv(batch, tb),)

    # VMEM estimate: double-buffered I/O tiles + single-buffered bf16 weights
    # + f32 biases + activation temporaries the compiler materializes.
    w_bytes = (w1.size + w2.size + w3.size + w4.size) * 2           # bf16
    b_bytes = 4 * (3 * 8 * 128 + 8 * _round_up(nb_movies, 128))     # f32, tile-padded
    io_bytes = 2 * 2 * tb * nb_movies * 4                           # x + out, 2 bufs
    act_bytes = 4 * tb * HIDDEN_PAD * 4 + tb * _round_up(nb_movies, 128) * 2
    vmem_need = io_bytes + w_bytes + b_bytes + act_bytes + (4 << 20)
    vmem_limit = int(min(max(vmem_need, 32 << 20), vmem_ceiling))

    cost = pl.CostEstimate(
        flops=2 * batch * (2 * nb_movies * HIDDEN_PAD + 2 * HIDDEN_PAD * HIDDEN_PAD),
        transcendentals=3 * batch * HIDDEN_PAD,
        bytes_accessed=2 * batch * nb_movies * 4 + w_bytes + b_bytes,
    )

    def const_spec(shape):
        # Grid-invariant operand: stays resident in VMEM, single-buffered.
        return pl.BlockSpec(shape, lambda i: (0, 0), pipeline_mode=pl.Buffered(1))

    io_map = lambda i: (i, 0)

    return pl.pallas_call(
        sae_kernel,
        out_shape=jax.ShapeDtypeStruct((batch, nb_movies), jnp.float32),
        grid=grid,
        in_specs=[
            pl.BlockSpec((tb, nb_movies), io_map),   # x tile (streamed)
            const_spec(w1.shape), const_spec(b1.shape),
            const_spec(w2.shape), const_spec(b2.shape),
            const_spec(w3.shape), const_spec(b3.shape),
            const_spec(w4.shape), const_spec(b4.shape),
        ],
        out_specs=pl.BlockSpec((tb, nb_movies), io_map),
        compiler_params=pltpu.CompilerParams(
            dimension_semantics=("parallel",),
            vmem_limit_bytes=vmem_limit,
        ),
        cost_estimate=cost,
    )(x, w1, b1, w2, b2, w3, b3, w4, b4)


def init_params(key, nb_movies):
    """Deterministic init mimicking PyTorch nn.Linear default
    (U[-1/sqrt(in), 1/sqrt(in)]); weights stored PyTorch-style [out, in]."""
    dims = [(nb_movies, 20), (20, 10), (10, 20), (20, nb_movies)]  # (in, out)
    params = {}
    for i, (fan_in, fan_out) in enumerate(dims, start=1):
        key, kw, kb = jax.random.split(key, 3)
        bound = 1.0 / jnp.sqrt(jnp.float32(fan_in))
        params[f"w{i}"] = jax.random.uniform(
            kw, (fan_out, fan_in), jnp.float32, minval=-bound, maxval=bound)
        params[f"b{i}"] = jax.random.uniform(
            kb, (fan_out,), jnp.float32, minval=-bound, maxval=bound)
    return params


def sae_reference(x, params):
    """Pure-JAX f32 reference of the PyTorch forward."""
    h = jax.nn.sigmoid(x @ params["w1"].T + params["b1"])
    h = jax.nn.sigmoid(h @ params["w2"].T + params["b2"])
    h = jax.nn.sigmoid(h @ params["w3"].T + params["b3"])
    return h @ params["w4"].T + params["b4"]


if __name__ == "__main__":
    nb_movies = 200   # stands in for int(max(...)) from the ratings data
    batch = 2

    key = jax.random.PRNGKey(0)
    key, kx = jax.random.split(key)
    params = init_params(key, nb_movies)
    prepared = prepare_params(params, nb_movies)

    x = jax.random.uniform(kx, (batch, nb_movies), jnp.float32)  # 0..1 "ratings"

    out = jax.block_until_ready(sae_forward(x, prepared))
    ref = sae_reference(x, params)
    assert out.shape == (batch, nb_movies)
    # bf16 matmul operands with f32 accumulation -> loosened tolerance.
    assert jnp.allclose(out, ref, atol=2e-2, rtol=2e-2)

    # Multi-tile path: larger batch + explicit batch tile -> several grid
    # steps, including a masked partial last block (20 rows, tile of 8).
    key, kx2 = jax.random.split(key)
    x2 = jax.random.uniform(kx2, (20, nb_movies), jnp.float32)
    out2 = jax.block_until_ready(sae_forward(x2, prepared, block_batch=8))
    ref2 = sae_reference(x2, params)
    assert out2.shape == (20, nb_movies)
    assert jnp.allclose(out2, ref2, atol=2e-2, rtol=2e-2)

    print("KERNEL_OK")
</pallas_src>

<mosaic_0001>
module attributes {stable_mosaic.version = 11 : i64} {
  func.func @sae_kernel(%arg0: i32, %arg1: memref<2x200xf32, #tpu.memory_space<vmem>>, %arg2: memref<200x128xbf16, #tpu.memory_space<vmem>>, %arg3: memref<1x128xf32, #tpu.memory_space<vmem>>, %arg4: memref<128x128xbf16, #tpu.memory_space<vmem>>, %arg5: memref<1x128xf32, #tpu.memory_space<vmem>>, %arg6: memref<128x128xbf16, #tpu.memory_space<vmem>>, %arg7: memref<1x128xf32, #tpu.memory_space<vmem>>, %arg8: memref<128x200xbf16, #tpu.memory_space<vmem>>, %arg9: memref<1x200xf32, #tpu.memory_space<vmem>>, %arg10: memref<2x200xf32, #tpu.memory_space<vmem>>) attributes {dimension_semantics = [#tpu.dimension_semantics<parallel>], iteration_bounds = array<i64: 1>, scalar_prefetch = 0 : i64, scratch_operands = 0 : i64, tpu.core_type = #tpu.core_type<tc>, window_params = [{transform_indices = @transform_0, window_bounds = array<i64: 2, 200>}, {pipeline_mode = #tpu.pipeline_mode<synchronous>, transform_indices = @transform_1, window_bounds = array<i64: 200, 128>}, {pipeline_mode = #tpu.pipeline_mode<synchronous>, transform_indices = @transform_2, window_bounds = array<i64: 1, 128>}, {pipeline_mode = #tpu.pipeline_mode<synchronous>, transform_indices = @transform_3, window_bounds = array<i64: 128, 128>}, {pipeline_mode = #tpu.pipeline_mode<synchronous>, transform_indices = @transform_4, window_bounds = array<i64: 1, 128>}, {pipeline_mode = #tpu.pipeline_mode<synchronous>, transform_indices = @transform_5, window_bounds = array<i64: 128, 128>}, {pipeline_mode = #tpu.pipeline_mode<synchronous>, transform_indices = @transform_6, window_bounds = array<i64: 1, 128>}, {pipeline_mode = #tpu.pipeline_mode<synchronous>, transform_indices = @transform_7, window_bounds = array<i64: 128, 200>}, {pipeline_mode = #tpu.pipeline_mode<synchronous>, transform_indices = @transform_8, window_bounds = array<i64: 1, 200>}, {transform_indices = @transform_9, window_bounds = array<i64: 2, 200>}]} {
    %c0 = arith.constant 0 : index
    %c0_0 = arith.constant 0 : index
    %0 = vector.load %arg1[%c0, %c0_0] : memref<2x200xf32, #tpu.memory_space<vmem>>, vector<2x200xf32>
    %1 = arith.truncf %0 : vector<2x200xf32> to vector<2x200xbf16>
    %c0_1 = arith.constant 0 : index
    %c0_2 = arith.constant 0 : index
    %2 = vector.load %arg2[%c0_1, %c0_2] : memref<200x128xbf16, #tpu.memory_space<vmem>>, vector<200x128xbf16>
    %cst = arith.constant dense<0.000000e+00> : vector<2x128xf32>
    %3 = tpu.matmul %1, %2, %cst {dimension_numbers = #tpu.dot_dimension_numbers<[1], [0], [0], [1], [0, 0, 1, 1], [], []>} : vector<2x200xbf16>, vector<200x128xbf16>, vector<2x128xf32> -> vector<2x128xf32>
    %c0_3 = arith.constant 0 : index
    %c0_4 = arith.constant 0 : index
    %4 = vector.load %arg3[%c0_3, %c0_4] : memref<1x128xf32, #tpu.memory_space<vmem>>, vector<1x128xf32>
    %5 = vector.broadcast %4 : vector<1x128xf32> to vector<2x128xf32>
    %6 = arith.addf %3, %5 : vector<2x128xf32>
    %7 = arith.negf %6 : vector<2x128xf32>
    %8 = math.exp %7 : vector<2x128xf32>
    %cst_5 = arith.constant 1.000000e+00 : f32
    %9 = vector.broadcast %cst_5 : f32 to vector<2x128xf32>
    %10 = arith.addf %9, %8 : vector<2x128xf32>
    %11 = arith.divf %9, %10 : vector<2x128xf32>
    %12 = arith.truncf %11 : vector<2x128xf32> to vector<2x128xbf16>
    %c0_6 = arith.constant 0 : index
    %c0_7 = arith.constant 0 : index
    %13 = vector.load %arg4[%c0_6, %c0_7] : memref<128x128xbf16, #tpu.memory_space<vmem>>, vector<128x128xbf16>
    %cst_8 = arith.constant dense<0.000000e+00> : vector<2x128xf32>
    %14 = tpu.matmul %12, %13, %cst_8 {dimension_numbers = #tpu.dot_dimension_numbers<[1], [0], [0], [1], [0, 0, 1, 1], [], []>} : vector<2x128xbf16>, vector<128x128xbf16>, vector<2x128xf32> -> vector<2x128xf32>
    %c0_9 = arith.constant 0 : index
    %c0_10 = arith.constant 0 : index
    %15 = vector.load %arg5[%c0_9, %c0_10] : memref<1x128xf32, #tpu.memory_space<vmem>>, vector<1x128xf32>
    %16 = vector.broadcast %15 : vector<1x128xf32> to vector<2x128xf32>
    %17 = arith.addf %14, %16 : vector<2x128xf32>
    %18 = arith.negf %17 : vector<2x128xf32>
    %19 = math.exp %18 : vector<2x128xf32>
    %cst_11 = arith.constant 1.000000e+00 : f32
    %20 = vector.broadcast %cst_11 : f32 to vector<2x128xf32>
    %21 = arith.addf %20, %19 : vector<2x128xf32>
    %22 = arith.divf %20, %21 : vector<2x128xf32>
    %23 = arith.truncf %22 : vector<2x128xf32> to vector<2x128xbf16>
    %c0_12 = arith.constant 0 : index
    %c0_13 = arith.constant 0 : index
    %24 = vector.load %arg6[%c0_12, %c0_13] : memref<128x128xbf16, #tpu.memory_space<vmem>>, vector<128x128xbf16>
    %cst_14 = arith.constant dense<0.000000e+00> : vector<2x128xf32>
    %25 = tpu.matmul %23, %24, %cst_14 {dimension_numbers = #tpu.dot_dimension_numbers<[1], [0], [0], [1], [0, 0, 1, 1], [], []>} : vector<2x128xbf16>, vector<128x128xbf16>, vector<2x128xf32> -> vector<2x128xf32>
    %c0_15 = arith.constant 0 : index
    %c0_16 = arith.constant 0 : index
    %26 = vector.load %arg7[%c0_15, %c0_16] : memref<1x128xf32, #tpu.memory_space<vmem>>, vector<1x128xf32>
    %27 = vector.broadcast %26 : vector<1x128xf32> to vector<2x128xf32>
    %28 = arith.addf %25, %27 : vector<2x128xf32>
    %29 = arith.negf %28 : vector<2x128xf32>
    %30 = math.exp %29 : vector<2x128xf32>
    %cst_17 = arith.constant 1.000000e+00 : f32
    %31 = vector.broadcast %cst_17 : f32 to vector<2x128xf32>
    %32 = arith.addf %31, %30 : vector<2x128xf32>
    %33 = arith.divf %31, %32 : vector<2x128xf32>
    %34 = arith.truncf %33 : vector<2x128xf32> to vector<2x128xbf16>
    %c0_18 = arith.constant 0 : index
    %c0_19 = arith.constant 0 : index
    %35 = vector.load %arg8[%c0_18, %c0_19] : memref<128x200xbf16, #tpu.memory_space<vmem>>, vector<128x200xbf16>
    %cst_20 = arith.constant dense<0.000000e+00> : vector<2x200xf32>
    %36 = tpu.matmul %34, %35, %cst_20 {dimension_numbers = #tpu.dot_dimension_numbers<[1], [0], [0], [1], [0, 0, 1, 1], [], []>} : vector<2x128xbf16>, vector<128x200xbf16>, vector<2x200xf32> -> vector<2x200xf32>
    %c0_21 = arith.constant 0 : index
    %c0_22 = arith.constant 0 : index
    %37 = vector.load %arg9[%c0_21, %c0_22] : memref<1x200xf32, #tpu.memory_space<vmem>>, vector<1x200xf32>
    %38 = vector.broadcast %37 : vector<1x200xf32> to vector<2x200xf32>
    %39 = arith.addf %36, %38 : vector<2x200xf32>
    %c0_23 = arith.constant 0 : index
    %c0_24 = arith.constant 0 : index
    %40 = vector.load %arg10[%c0_23, %c0_24] : memref<2x200xf32, #tpu.memory_space<vmem>>, vector<2x200xf32>
    tpu.vector_store %arg10[%c0_23, %c0_24], %39 {strides = array<i32>} : memref<2x200xf32, #tpu.memory_space<vmem>>, vector<2x200xf32>,
    return
  }
  func.func @transform_0(%arg0: i32) -> (i32, i32) {
    %c0_i32 = arith.constant 0 : i32
    %c0_i32_0 = arith.constant 0 : i32
    return %arg0, %c0_i32 : i32, i32
  }
  func.func @transform_1(%arg0: i32) -> (i32, i32) {
    %c0_i32 = arith.constant 0 : i32
    %c0_i32_0 = arith.constant 0 : i32
    %c0_i32_1 = arith.constant 0 : i32
    return %c0_i32, %c0_i32_0 : i32, i32
  }
  func.func @transform_2(%arg0: i32) -> (i32, i32) {
    %c0_i32 = arith.constant 0 : i32
    %c0_i32_0 = arith.constant 0 : i32
    %c0_i32_1 = arith.constant 0 : i32
    return %c0_i32, %c0_i32_0 : i32, i32
  }
  func.func @transform_3(%arg0: i32) -> (i32, i32) {
    %c0_i32 = arith.constant 0 : i32
    %c0_i32_0 = arith.constant 0 : i32
    %c0_i32_1 = arith.constant 0 : i32
    return %c0_i32, %c0_i32_0 : i32, i32
  }
  func.func @transform_4(%arg0: i32) -> (i32, i32) {
    %c0_i32 = arith.constant 0 : i32
    %c0_i32_0 = arith.constant 0 : i32
    %c0_i32_1 = arith.constant 0 : i32
    return %c0_i32, %c0_i32_0 : i32, i32
  }
  func.func @transform_5(%arg0: i32) -> (i32, i32) {
    %c0_i32 = arith.constant 0 : i32
    %c0_i32_0 = arith.constant 0 : i32
    %c0_i32_1 = arith.constant 0 : i32
    return %c0_i32, %c0_i32_0 : i32, i32
  }
  func.func @transform_6(%arg0: i32) -> (i32, i32) {
    %c0_i32 = arith.constant 0 : i32
    %c0_i32_0 = arith.constant 0 : i32
    %c0_i32_1 = arith.constant 0 : i32
    return %c0_i32, %c0_i32_0 : i32, i32
  }
  func.func @transform_7(%arg0: i32) -> (i32, i32) {
    %c0_i32 = arith.constant 0 : i32
    %c0_i32_0 = arith.constant 0 : i32
    %c0_i32_1 = arith.constant 0 : i32
    return %c0_i32, %c0_i32_0 : i32, i32
  }
  func.func @transform_8(%arg0: i32) -> (i32, i32) {
    %c0_i32 = arith.constant 0 : i32
    %c0_i32_0 = arith.constant 0 : i32
    %c0_i32_1 = arith.constant 0 : i32
    return %c0_i32, %c0_i32_0 : i32, i32
  }
  func.func @transform_9(%arg0: i32) -> (i32, i32) {
    %c0_i32 = arith.constant 0 : i32
    %c0_i32_0 = arith.constant 0 : i32
    return %arg0, %c0_i32 : i32, i32
  }
}

</mosaic_0001>

<bundles_post_ra>
// kernel: tpu_custom_call.1
= control target key start
LH: loop header
LB: loop body
LE: loop exit
PB: predicated region body
PF: predicated region fallthrough
CT: control target
= control target key end

     0   :  { %14 = vsyncpa [#allocation3], 0  ;;  %s1074_s0 = inlined_call_operand.hbm [shape: f32[2,200], index: 0, kind: input, shape index: {}]   ;;  %s1075_s1 = inlined_call_operand.vmem [shape: bf16[200,128], index: 1, kind: input, shape index: {}]   ;;  %s1076_s2 = inlined_call_operand.vmem [shape: f32[1,128], index: 2, kind: input, shape index: {}]   ;;  %s1077_s3 = inlined_call_operand.vmem [shape: bf16[128,128], index: 3, kind: input, shape index: {}]   ;;  %s1078_s4 = inlined_call_operand.vmem [shape: f32[1,128], index: 4, kind: input, shape index: {}]   ;;  %s1079_s5 = inlined_call_operand.vmem [shape: bf16[128,128], index: 5, kind: input, shape index: {}]   ;;  %s1080_s6 = inlined_call_operand.vmem [shape: f32[1,128], index: 6, kind: input, shape index: {}]   ;;  %s1081_s7 = inlined_call_operand.vmem [shape: bf16[128,200], index: 7, kind: input, shape index: {}]   ;;  %s1082_s8 = inlined_call_operand.vmem [shape: f32[1,200], index: 8, kind: input, shape index: {}]   ;;  %s1083_s9 = inlined_call_operand.hbm [shape: f32[2,200], index: 9, kind: output, shape index: {}]  }
   0x1   :  { %15 = vsyncpa [#allocation4], 0  ;;  %s863_s30 = smov [#allocation2]  }
   0x2   :  { %s22_s10 = sshll.u32 %s863_s30, 4  ;;  %s23_s10 = int_to_ptr.vmem [resolvable:$true] %s22_s10 }
   0x3   :  { %s827_s11 = scalar_lea.vmem %s23_s10, 64  ;;  %p832_p1 = scmp.lt.s32.totalorder %s23_s10, %s23_s10 }
   0x4   :  { %p828_p0 = scmp.ne.s32.totalorder %s23_s10, %s827_s11  ;;  %p833_p2 = scmp.lt.s32.totalorder %s827_s11, %s827_s11 }
   0x6   :  { %p834_p3 = por %p833_p2, %p832_p1 }
   0x8   :  { %p835_p4 = pnand %p834_p3, %p828_p0 }
   0xa   :  { %838 = shalt.err (!%p835_p4)
}
   0xb   :  { %25 = dma.hbm_to_vmem [thread:$0]  %s1074_s0, 64, %s23_s10, [#allocation3]  }
   0xc   :  { %859 = dma.done.wait [#allocation3], 64  }
   0xd   :  { %860 = vsyncadd [#allocation3], 4294967232  ;;  %v864_v0 = vmov 0   ;;  %v754_v1 = vld [vmem:[%s1075_s1 + $0x38] sm:$0xff]   ;;  %v755_v2 = vld [vmem:[%s1075_s1 + $0x30] sm:$0xff]   ;;  %vm167_vm0 = vcmask 588800  }
   0xe   :  { %175 = vmatprep.subr.bf16.mxu0 %v864_v0  ;;  %v756_v3 = vld [vmem:[%s1075_s1 + $0x28] sm:$0xff]   ;;  %v757_v4 = vld [vmem:[%s1075_s1 + $0x20] sm:$0xff]   ;;  %v758_v5 = vld [vmem:[%s1075_s1 + $0x18] sm:$0xff]   ;;  %vm171_vm1 = vcmask 1043456   ;;  %v865_v20 = vmov 0.0   ;;  %vm866_vm2 = vmmov 0  }
   0xf   :  { %176 = vmatpush1.bf16.msra.mxu0 %v754_v1  ;;  %v637_v6 = vld.sshfl [vmem:[#allocation2] sm:$0x33 pattern:$0x76325410]  ;;  %v759_v8 = vld [vmem:[%s1075_s1 + $0x10] sm:$0xff]   ;;  %v760_v10 = vld [vmem:[%s1075_s1 + $0x8] sm:$0xff]   ;;  %708 = vmatprep.subr.bf16.mxu1 %v865_v20 }
  0x10   :  { %177 = vmatprep.subr.bf16.mxu0 %v864_v0  ;;  %v55_v7 = vcombine.high %v637_v6, %v637_v6  ;;  %v761_v11 = vld [vmem:[%s1075_s1] sm:$0xff]   ;;  %v763_v14 = vld [vmem:[%s1075_s1 + $0x58] sm:$0xff]   ;;  %v764_v15 = vld [vmem:[%s1075_s1 + $0x50] sm:$0xff]   ;;  %v58_v18 = vpack.c.bf16 %v637_v6, %v637_v6  ;;  %724 = vmatprep.mubr.msk.bf16.mxu1 %vm866_vm2, %v865_v20  ;;  %vm618_vm3 = vcmask 1041408   ;;  %vm619_vm4 = vcmask 584706   ;;  %s868_s11 = smov [#allocation5]  }
  0x11   :  { %v762_v12 = vld [vmem:[%s1075_s1 + $0x60] ss:$0 sps:$4 sm:$0xff]   ;;  %v765_v16 = vld [vmem:[%s1075_s1 + $0x48] sm:$0xff]   ;;  %v767_v19 = vld [vmem:[%s1077_s3 + $0x38] sm:$0xff]   ;;  %s628_s12 = sshll.u32 %s868_s11, 4  ;;  %s629_s12 = int_to_ptr.vmem [resolvable:$true] %s628_s12 }
  0x12   :  { %v59_v9 = vpack.c.bf16 %v55_v7, %v55_v7  ;;  %v173_v13 = vsel %vm171_vm1, %v762_v12, 0  ;;  %v766_v17 = vld [vmem:[%s1075_s1 + $0x40] sm:$0xff]   ;;  %709 = vmatpush3.bf16.msra.mxu1 %v767_v19  ;;  %v768_v21 = vld [vmem:[%s1077_s3 + $0x30] sm:$0xff]   ;;  %v769_v22 = vld [vmem:[%s1077_s3 + $0x28] sm:$0xff]   ;;  %p844_p6 = scmp.lt.s32.totalorder %s629_s12, %s629_s12 }
  0x13   :  { %178 = vmatpush1.bf16.msra.mxu0 %v755_v2  ;;  %710 = vmatprep.subr.bf16.mxu1 %v865_v20  ;;  %v770_v23 = vld [vmem:[%s1077_s3 + $0x20] sm:$0xff]   ;;  %v771_v24 = vld [vmem:[%s1077_s3 + $0x18] sm:$0xff]   ;;  %v772_v25 = vld [vmem:[%s1077_s3 + $0x10] sm:$0xff]  }
  0x14   :  { %179 = vmatprep.subr.bf16.mxu0 %v864_v0  ;;  %652 = vmatprep.mubr.msk.bf16.mxu0 %vm167_vm0, %v59_v9  ;;  %v773_v26 = vld [vmem:[%s1077_s3 + $0x8] sm:$0xff]   ;;  %v774_v27 = vld [vmem:[%s1077_s3] sm:$0xff]   ;;  %v775_v39 = vld [vmem:[%s1079_s5 + $0x38] sm:$0xff]  }
  0x15   :  { %v638_v28 = vld [vmem:[%s1076_s2] ss:$0 sm:$0xff]  ;;  %v776_v40 = vld [vmem:[%s1079_s5 + $0x30] sm:$0xff]   ;;  %v777_v41 = vld [vmem:[%s1079_s5 + $0x28] sm:$0xff]  }
  0x16   :  { %711 = vmatpush3.bf16.msra.mxu1 %v768_v21  ;;  %v778_v42 = vld [vmem:[%s1079_s5 + $0x20] sm:$0xff]   ;;  %v779_v43 = vld [vmem:[%s1079_s5 + $0x18] sm:$0xff]   ;;  %v780_v44 = vld [vmem:[%s1079_s5 + $0x10] sm:$0xff]   ;;  %v476_v21 = vlaneseq }
  0x17   :  { %180 = vmatpush1.bf16.msra.mxu0 %v756_v3  ;;  %712 = vmatprep.subr.bf16.mxu1 %v865_v20  ;;  %v781_v45 = vld [vmem:[%s1079_s5 + $0x8] sm:$0xff]   ;;  %v782_v46 = vld [vmem:[%s1079_s5] sm:$0xff]   ;;  %v785_v58 = vld [vmem:[%s1081_s7 + $0x74] ss:$8 sps:$4 sm:$0xff]  }
  0x18   :  { %181 = vmatprep.subr.bf16.mxu0 %v864_v0  ;;  %v654_v47 = vld [vmem:[%s1078_s4] ss:$0 sm:$0xff]  ;;  %v783_v59 = vld [vmem:[%s1081_s7 + $0x70] ss:$8 sps:$4 sm:$0xff]   ;;  %v788_v60 = vld [vmem:[%s1081_s7 + $0x64] ss:$8 sps:$4 sm:$0xff]  }
  0x19   :  { %v786_v61 = vld [vmem:[%s1081_s7 + $0x60] ss:$8 sps:$4 sm:$0xff]   ;;  %v791_v62 = vld [vmem:[%s1081_s7 + $0x54] ss:$8 sps:$4 sm:$0xff]   ;;  %v789_v63 = vld [vmem:[%s1081_s7 + $0x50] ss:$8 sps:$4 sm:$0xff]  }
  0x1a   :  { %713 = vmatpush3.bf16.msra.mxu1 %v769_v22  ;;  %v792_v1 = vld [vmem:[%s1081_s7 + $0x40] ss:$8 sps:$4 sm:$0xff]   ;;  %v797_v2 = vld [vmem:[%s1081_s7 + $0x34] ss:$8 sps:$4 sm:$0xff]   ;;  %v795_v3 = vld [vmem:[%s1081_s7 + $0x30] ss:$8 sps:$4 sm:$0xff]  }
  0x1b   :  { %182 = vmatpush1.bf16.msra.mxu0 %v757_v4  ;;  %714 = vmatprep.subr.bf16.mxu1 %v865_v20  ;;  %v800_v4 = vld [vmem:[%s1081_s7 + $0x24] ss:$8 sps:$4 sm:$0xff]   ;;  %v803_v6 = vld [vmem:[%s1081_s7 + $0x14] ss:$8 sps:$4 sm:$0xff]   ;;  %v801_v7 = vld [vmem:[%s1081_s7 + $0x10] ss:$8 sps:$4 sm:$0xff]  }
  0x1c   :  { %183 = vmatprep.subr.bf16.mxu0 %v864_v0  ;;  %v804_v9 = vld [vmem:[%s1081_s7] ss:$8 sps:$4 sm:$0xff]   ;;  %v477_v22 = vshrl.u32 %v476_v21, 7  ;;  %vm620_vm5 = vmor %vm619_vm4, %vm618_vm3 }
  0x1e   :  { %715 = vmatpush3.bf16.msra.mxu1 %v770_v23  ;;  %v867_v23 = vmov 1983009808  }
  0x1f   :  { %184 = vmatpush1.bf16.msra.mxu0 %v758_v5  ;;  %716 = vmatprep.subr.bf16.mxu1 %v865_v20  ;;  %v798_v5 = vld [vmem:[%s1081_s7 + $0x20] ss:$8 sps:$4 sm:$0xff]  }
  0x20   :  { %185 = vmatprep.subr.bf16.mxu0 %v864_v0 }
  0x22   :  { %717 = vmatpush3.bf16.msra.mxu1 %v771_v24  ;;  %v611_v24 = vunpack.c.l.s4 %v867_v23 }
  0x23   :  { %186 = vmatpush1.bf16.msra.mxu0 %v759_v8  ;;  %718 = vmatprep.subr.bf16.mxu1 %v865_v20  ;;  %v806_v8 = vld [vmem:[%s1081_s7 + $0x4] ss:$8 sps:$4 sm:$0xff]  }
  0x24   :  { %187 = vmatprep.subr.bf16.mxu0 %v864_v0 }
  0x26   :  { %719 = vmatpush3.bf16.msra.mxu1 %v772_v25  ;;  %v478_v25 = vsub.s32 0, %v477_v22 }
  0x27   :  { %188 = vmatpush1.bf16.msra.mxu0 %v760_v10  ;;  %720 = vmatprep.subr.bf16.mxu1 %v865_v20  ;;  %v664_v10 = vld [vmem:[%s1080_s6] ss:$0 sm:$0xff] }
  0x28   :  { %189 = vmatprep.subr.bf16.mxu0 %v864_v0 }
  0x2a   :  { %721 = vmatpush3.bf16.msra.mxu1 %v773_v26  ;;  %v482_v26 = vsub.s32 1, %v477_v22 }
  0x2b   :  { %190 = vmatpush1.bf16.msra.mxu0 %v761_v11  ;;  %722 = vmatprep.subr.bf16.mxu1 %v865_v20 }
  0x2c   :  { %197 = vmatprep.subr.bf16.mxu0 %v864_v0 }
  0x2e   :  { %723 = vmatpush3.bf16.msra.mxu1 %v774_v27  ;;  %v474_v27 = vld [vmem:[%s1082_s8] sm:$0x3]  ;;  %s839_s8 = scalar_lea.vmem %s629_s12, 64 }
  0x2f   :  { %198 = vmatpush2.bf16.msra.mxu0 %v173_v13  ;;  %728 = vmatprep.subr.bf16.mxu1 %v865_v20  ;;  %p840_p5 = scmp.ne.s32.totalorder %s629_s12, %s839_s8  ;;  %p845_p7 = scmp.lt.s32.totalorder %s839_s8, %s839_s8 }
  0x30   :  { %199 = vmatprep.subr.bf16.mxu0 %v864_v0 }
  0x31   :  { %p846_p8 = por %p845_p7, %p844_p6 }
  0x33   :  { %200 = vmatpush2.bf16.msra.mxu0 %v763_v14  ;;  %p847_p9 = pnand %p846_p8, %p840_p5 }
  0x34   :  { %201 = vmatprep.subr.bf16.mxu0 %v864_v0 }
  0x37   :  { %202 = vmatpush2.bf16.msra.mxu0 %v764_v15 }
  0x38   :  { %203 = vmatprep.subr.bf16.mxu0 %v864_v0 }
  0x3b   :  { %204 = vmatpush2.bf16.msra.mxu0 %v765_v16 }
  0x3c   :  { %205 = vmatprep.subr.bf16.mxu0 %v864_v0 }
  0x3f   :  { %206 = vmatpush2.bf16.msra.mxu0 %v766_v17 }
  0x40   :  { %566 = vmatprep.subr.bf16.mxu0 %v785_v58 }
  0x42   :  { %208 = vmatmul.mubr.bf16.vlgmr.msra.gmra.mxu0 %v58_v18 }
  0x43   :  { %598 = vmatprep.mubr.bf16.mxu0 %v864_v0  ;;  %567 = vmatpush1.bf16.msra.mxu0 %v783_v59  ;;  %v794_v0 = vld [vmem:[%s1081_s7 + $0x44] ss:$8 sps:$4 sm:$0xff]  }
  0x44   :  { %568 = vmatprep.subr.bf16.mxu0 %v788_v60 }
  0x47   :  { %569 = vmatpush1.bf16.msra.mxu0 %v786_v61 }
  0x48   :  { %570 = vmatprep.subr.bf16.mxu0 %v791_v62 }
  0x4b   :  { %571 = vmatpush1.bf16.msra.mxu0 %v789_v63 }
  0x4c   :  { %572 = vmatprep.subr.bf16.mxu0 %v794_v0 }
  0x4f   :  { %573 = vmatpush1.bf16.msra.mxu0 %v792_v1 }
  0x50   :  { %574 = vmatprep.subr.bf16.mxu0 %v797_v2 }
  0x53   :  { %575 = vmatpush1.bf16.msra.mxu0 %v795_v3 }
  0x54   :  { %576 = vmatprep.subr.bf16.mxu0 %v800_v4 }
  0x57   :  { %577 = vmatpush1.bf16.msra.mxu0 %v798_v5 }
  0x58   :  { %578 = vmatprep.subr.bf16.mxu0 %v803_v6 }
  0x5b   :  { %579 = vmatpush1.bf16.msra.mxu0 %v801_v7 }
  0x5c   :  { %580 = vmatprep.subr.bf16.mxu0 %v806_v8 }
  0x5f   :  { %581 = vmatpush1.bf16.msra.mxu0 %v804_v9 }
 0x102   :  { %v209_v29 = vpop.f32.mrf.mxu0 }
 0x103   :  { %v210_v30 = vadd.f32 %v638_v28, %v209_v29  ;;  %v612_v28 = vunpack.c.0.s8 %v611_v24  ;;  %v479_v29 = vrot.slane %v474_v27, %v478_v25 }
 0x104   :  { %v211_v31 = vpop.f32.mrf.mxu0 }
 0x105   :  { %v653_v32 = vmul.f32 -1.442695, %v210_v30  ;;  %v483_v30 = vrot.slane %v474_v27, %v482_v26 }
 0x106   :  { %v212_v33 = vpop.f32.mrf.mxu0 }
 0x107   :  { %807 = vpow2.f32 %v653_v32  ;;  %v615_v33 = vsub.s32 %v612_v28, %v477_v22 }
 0x108   :  { %v213_v34 = vpop.f32.mrf.mxu0 }
 0x114   :  { %v808_v35 = vpop.eup %807 }
 0x115   :  { %v218_v36 = vadd.f32 1.0, %v808_v35 }
 0x117   :  { %809 = vrcp.f32 %v218_v36 }
 0x124   :  { %v810_v37 = vpop.eup %809 }
 0x125   :  { %v221_v38 = vpack.c.bf16 %v810_v37, %v810_v37 }
 0x127   :  { %725 = vmatmul.mubr.bf16.vlgmr.msra.gmra.mxu1 %v221_v38 }
 0x128   :  { %744 = vmatprep.mubr.msk.bf16.mxu1 %vm866_vm2, %v865_v20  ;;  %729 = vmatpush3.bf16.msra.mxu1 %v775_v39 }
 0x129   :  { %730 = vmatprep.subr.bf16.mxu1 %v865_v20 }
 0x12c   :  { %731 = vmatpush3.bf16.msra.mxu1 %v776_v40 }
 0x12d   :  { %732 = vmatprep.subr.bf16.mxu1 %v865_v20 }
 0x130   :  { %733 = vmatpush3.bf16.msra.mxu1 %v777_v41 }
 0x131   :  { %734 = vmatprep.subr.bf16.mxu1 %v865_v20 }
 0x134   :  { %735 = vmatpush3.bf16.msra.mxu1 %v778_v42 }
 0x135   :  { %736 = vmatprep.subr.bf16.mxu1 %v865_v20 }
 0x138   :  { %737 = vmatpush3.bf16.msra.mxu1 %v779_v43 }
 0x139   :  { %738 = vmatprep.subr.bf16.mxu1 %v865_v20 }
 0x13c   :  { %739 = vmatpush3.bf16.msra.mxu1 %v780_v44 }
 0x13d   :  { %740 = vmatprep.subr.bf16.mxu1 %v865_v20 }
 0x140   :  { %741 = vmatpush3.bf16.msra.mxu1 %v781_v45 }
 0x141   :  { %742 = vmatprep.subr.bf16.mxu1 %v865_v20 }
 0x144   :  { %743 = vmatpush3.bf16.msra.mxu1 %v782_v46 }
 0x1e7   :  { %v327_v48 = vpop.f32.mrf.mxu1 }
 0x1e8   :  { %v328_v49 = vadd.f32 %v654_v47, %v327_v48 }
 0x1e9   :  { %v726_v50 = vpop.f32.mrf.mxu1 }
 0x1ea   :  { %v663_v51 = vmul.f32 -1.442695, %v328_v49 }
 0x1eb   :  { %v330_v52 = vpop.f32.mrf.mxu1 }
 0x1ec   :  { %811 = vpow2.f32 %v663_v51 }
 0x1ed   :  { %v727_v53 = vpop.f32.mrf.mxu1 }
 0x1f9   :  { %v812_v54 = vpop.eup %811 }
 0x1fa   :  { %v336_v55 = vadd.f32 1.0, %v812_v54 }
 0x1fc   :  { %813 = vrcp.f32 %v336_v55 }
 0x209   :  { %v814_v56 = vpop.eup %813 }
 0x20a   :  { %v339_v57 = vpack.c.bf16 %v814_v56, %v814_v56 }
 0x20c   :  { %745 = vmatmul.mubr.bf16.vlgmr.msra.gmra.mxu1 %v339_v57 }
 0x2cc   :  { %v445_v11 = vpop.f32.mrf.mxu1 }
 0x2cd   :  { %v446_v12 = vadd.f32 %v664_v10, %v445_v11 }
 0x2ce   :  { %v746_v13 = vpop.f32.mrf.mxu1 }
 0x2cf   :  { %v673_v14 = vmul.f32 -1.442695, %v446_v12 }
 0x2d0   :  { %v448_v15 = vpop.f32.mrf.mxu1 }
 0x2d1   :  { %815 = vpow2.f32 %v673_v14 }
 0x2d2   :  { %v747_v16 = vpop.f32.mrf.mxu1 }
 0x2de   :  { %v816_v17 = vpop.eup %815 }
 0x2df   :  { %v454_v18 = vadd.f32 1.0, %v816_v17 }
 0x2e1   :  { %817 = vrcp.f32 %v454_v18 }
 0x2ee   :  { %v818_v19 = vpop.eup %817 }
 0x2ef   :  { %v457_v20 = vpack.c.bf16 %v818_v19, %v818_v19 }
 0x2f1   :  { %599 = vmatmul.mubr.bf16.vlgmr.msra.gmra.mxu0 %v457_v20 }
 0x3b1   :  { %v600_v31 = vpop.f32.mrf.mxu0 }
 0x3b2   :  { %v601_v34 = vadd.f32 %v600_v31, %v479_v29 }
 0x3b3   :  { %v602_v32 = vpop.f32.mrf.mxu0 }
 0x3b4   :  { %v603_v35 = vadd.f32 %v602_v32, %v483_v30 }
 0x3b5   :  { %v604_v36 = vpop.f32.mrf.mxu0 }
 0x3b6   :  { %v609_v37 = vcombine.low %v601_v34, %v603_v35 }
 0x3b7   :  { %v605_v38 = vpop.f32.mrf.mxu0 }
 0x3b8   :  { %v616_v39 = vrot.slane %v609_v37, %v615_v33 }
 0x3ba   :  { %621 = vst.msk [vmem:[#allocation5] sm:$0xf] %vm620_vm5, %v616_v39 }
 0x3bb   :  { %850 = shalt.err (!%p847_p9)
}
 0x3bc   :  { %631 = dma.vmem_to_hbm [thread:$0]  %s629_s12, 64, %s1083_s9, [#allocation4]  }
 0x3bd   :  { %861 = dma.done.wait [#allocation4], 64  }
 0x3be   :  { %862 = vsyncadd [#allocation4], 4294967232 }
 0x3bf   :  { %635 = vsyncpa [#allocation3], 1 }
 0x3c0   :  { %636 = vsyncpa [#allocation4], 1 }

</bundles_post_ra>
